<compile_context>
chip_gen: v6e
topology: v6e:2x2x1
jax: 0.10.0
libtpu: 0.0.40
codegen_flags: <defaults>
</compile_context>

<pallas_src>
import jax
import jax.numpy as jnp
from jax.experimental import pallas as pl
from jax.experimental.pallas import tpu as pltpu

EPS = 1e-5
_VMEM_LIMIT = 32 * 1024 * 1024       # safe on v5e/v6e/v7x
_TILE_BYTES = 2 * 1024 * 1024        # per-tile f32 working-set budget


def _pick_tile(dim, unit, max_tile):
    """Largest divisor of `dim` that is a multiple of `unit` and <= max_tile.

    Falls back to the full dim if `dim` is not a multiple of `unit`
    (a block equal to the full dimension is always legal)."""
    if dim % unit != 0:
        return dim
    best = unit
    t = unit
    limit = min(dim, max(max_tile, unit))
    while t <= limit:
        if dim % t == 0:
            best = t
        t += unit
    return best


def _stats_kernel(x_ref, sum_ref, sumsq_ref):
    """Accumulate per-channel sum / sum-of-squares over the (N, H*W) extent."""

    @pl.when(jnp.logical_and(pl.program_id(1) == 0, pl.program_id(2) == 0))
    def _():
        sum_ref[...] = jnp.zeros_like(sum_ref)
        sumsq_ref[...] = jnp.zeros_like(sumsq_ref)

    x = x_ref[0].astype(jnp.float32)                          # (Ct, Lt)
    sum_ref[...] += jnp.sum(x, axis=1, keepdims=True)         # (Ct, 1)
    sumsq_ref[...] += jnp.sum(x * x, axis=1, keepdims=True)   # (Ct, 1)


def _apply_kernel(x_ref, scale_ref, shift_ref, o_ref):
    """y = x * scale + shift; per-channel scale/shift broadcast over lanes."""
    x = x_ref[0].astype(jnp.float32)                          # (Ct, Lt)
    y = x * scale_ref[...] + shift_ref[...]                   # (Ct, 1) bcast
    o_ref[0] = y.astype(o_ref.dtype)


def asr_batchnorm2d_pallas(x_nchw, gamma, beta, attn_weights, eps=EPS):
    """x_nchw: (N, C, H, W); gamma/beta/attn_weights: (C,). Returns (N, C, H, W)."""
    N, C, H, W = x_nchw.shape
    HW = H * W
    x3 = x_nchw.reshape(N, C, HW)        # free reshape; native NCHW layout

    ct = _pick_tile(C, 8, 64)                                    # sublane tile
    lt = _pick_tile(HW, 128, max(128, _TILE_BYTES // (4 * ct)))  # lane tile
    c_tiles = C // ct
    l_tiles = HW // lt

    # ---- pass 1: per-channel sum / sum-of-squares (streaming reduction) ----
    sums, sumsqs = pl.pallas_call(
        _stats_kernel,
        out_shape=(jax.ShapeDtypeStruct((C, 1), jnp.float32),
                   jax.ShapeDtypeStruct((C, 1), jnp.float32)),
        grid=(c_tiles, N, l_tiles),
        in_specs=[pl.BlockSpec((1, ct, lt), lambda c, n, l: (n, c, l))],
        out_specs=(pl.BlockSpec((ct, 1), lambda c, n, l: (c, 0)),
                   pl.BlockSpec((ct, 1), lambda c, n, l: (c, 0))),
        compiler_params=pltpu.CompilerParams(
            dimension_semantics=("parallel", "arbitrary", "arbitrary"),
            vmem_limit_bytes=_VMEM_LIMIT),
    )(x3)

    # ---- tiny O(C) fold: stats + gamma/beta/attention -> scale & shift ----
    m = jnp.float32(N * HW)
    mean = sums[:, 0] / m                                        # (C,)
    var = jnp.maximum(sumsqs[:, 0] / m - mean * mean, 0.0)       # biased var
    inv_std = jax.lax.rsqrt(var + eps)
    g_eff = gamma.astype(jnp.float32) * attn_weights.astype(jnp.float32)
    b_eff = beta.astype(jnp.float32) * attn_weights.astype(jnp.float32)
    scale = (g_eff * inv_std).reshape(C, 1)
    shift = (b_eff - g_eff * inv_std * mean).reshape(C, 1)

    # ---- pass 2: y = x * scale + shift (fully parallel, lane-dense) ----
    out3 = pl.pallas_call(
        _apply_kernel,
        out_shape=jax.ShapeDtypeStruct((N, C, HW), x_nchw.dtype),
        grid=(N, c_tiles, l_tiles),
        in_specs=[
            pl.BlockSpec((1, ct, lt), lambda n, c, l: (n, c, l)),
            pl.BlockSpec((ct, 1), lambda n, c, l: (c, 0)),
            pl.BlockSpec((ct, 1), lambda n, c, l: (c, 0)),
        ],
        out_specs=pl.BlockSpec((1, ct, lt), lambda n, c, l: (n, c, l)),
        compiler_params=pltpu.CompilerParams(
            dimension_semantics=("parallel", "parallel", "parallel"),
            vmem_limit_bytes=_VMEM_LIMIT),
    )(x3, scale, shift)

    return out3.reshape(N, C, H, W)


def se_attention_weights(vector_nchw, w1, b1, w2, b2):
    """SE-style attention on the (1, C, 1, 1) vector. Plain-JAX glue (O(C) compute).

    adaptive-avg-pool over the 1x1 spatial extent is an identity here."""
    C = vector_nchw.shape[1]
    s = vector_nchw.reshape(1, C)
    h = jnp.maximum(s @ w1.T + b1, 0.0)          # (1, C//r)
    a = jax.nn.sigmoid(h @ w2.T + b2)            # (1, C)
    return a.reshape(C)


def reference_forward(x, gamma, beta, attn):
    """Pure-JAX reference matching PyTorch BatchNorm2d(train) * attn."""
    mean = jnp.mean(x, axis=(0, 2, 3), keepdims=True)
    var = jnp.mean((x - mean) ** 2, axis=(0, 2, 3), keepdims=True)
    y = (x - mean) * jax.lax.rsqrt(var + EPS)
    y = y * gamma.reshape(1, -1, 1, 1) + beta.reshape(1, -1, 1, 1)
    return y * attn.reshape(1, -1, 1, 1)


if __name__ == "__main__":
    key = jax.random.PRNGKey(0)
    N, C, H, W = 2, 4, 16, 16
    reduction = 2

    k_x, k_w1, k_w2 = jax.random.split(key, 3)
    x = jax.random.normal(k_x, (N, C, H, W), dtype=jnp.float32)

    # BatchNorm2d parameters (PyTorch defaults: weight=1, bias=0)
    gamma = jnp.ones((C,), dtype=jnp.float32)
    beta = jnp.zeros((C,), dtype=jnp.float32)

    # self.vector = 0.1 everywhere, shape (1, C, 1, 1)
    vector = jnp.full((1, C, 1, 1), 0.1, dtype=jnp.float32)

    # Deterministic SE attention weights
    w1 = 0.1 * jax.random.normal(k_w1, (C // reduction, C), dtype=jnp.float32)
    b1 = jnp.zeros((C // reduction,), dtype=jnp.float32)
    w2 = 0.1 * jax.random.normal(k_w2, (C, C // reduction), dtype=jnp.float32)
    b2 = jnp.zeros((C,), dtype=jnp.float32)

    attn = se_attention_weights(vector, w1, b1, w2, b2)   # (C,)

    out = asr_batchnorm2d_pallas(x, gamma, beta, attn)
    out = jax.block_until_ready(out)

    ref = reference_forward(x, gamma, beta, attn)
    assert out.shape == (N, C, H, W)
    assert jnp.allclose(out, ref, atol=1e-4, rtol=1e-4), "mismatch vs reference"

    print("KERNEL_OK")
</pallas_src>

<mosaic_0001>
module attributes {stable_mosaic.version = 11 : i64} {
  func.func @_stats_kernel(%arg0: i32, %arg1: i32, %arg2: i32, %arg3: memref<1x4x256xf32, #tpu.memory_space<vmem>>, %arg4: memref<4x1xf32, #tpu.memory_space<vmem>>, %arg5: memref<4x1xf32, #tpu.memory_space<vmem>>) attributes {dimension_semantics = [#tpu.dimension_semantics<parallel>, #tpu.dimension_semantics<arbitrary>, #tpu.dimension_semantics<arbitrary>], iteration_bounds = array<i64: 1, 2, 1>, scalar_prefetch = 0 : i64, scratch_operands = 0 : i64, tpu.core_type = #tpu.core_type<tc>, window_params = [{transform_indices = @transform_0, window_bounds = array<i64: 1, 4, 256>}, {transform_indices = @transform_1, window_bounds = array<i64: 4, 1>}, {transform_indices = @transform_2, window_bounds = array<i64: 4, 1>}]} {
    %c0_i32 = arith.constant 0 : i32
    %0 = arith.cmpi eq, %arg1, %c0_i32 : i32
    %c0_i32_0 = arith.constant 0 : i32
    %1 = arith.cmpi eq, %arg2, %c0_i32_0 : i32
    %2 = arith.andi %0, %1 : i1
    %3 = arith.extui %2 : i1 to i32
    %c0_i32_1 = arith.constant 0 : i32
    %4 = arith.cmpi ne, %3, %c0_i32_1 : i32
    scf.if %4 {
      %cst_13 = arith.constant 0.000000e+00 : f32
      %18 = vector.broadcast %cst_13 : f32 to vector<4x1xf32>
      %c0_14 = arith.constant 0 : index
      %c0_15 = arith.constant 0 : index
      %19 = vector.load %arg4[%c0_14, %c0_15] : memref<4x1xf32, #tpu.memory_space<vmem>>, vector<4x1xf32>
      tpu.vector_store %arg4[%c0_14, %c0_15], %18 {strides = array<i32>} : memref<4x1xf32, #tpu.memory_space<vmem>>, vector<4x1xf32>,
      %cst_16 = arith.constant 0.000000e+00 : f32
      %20 = vector.broadcast %cst_16 : f32 to vector<4x1xf32>
      %c0_17 = arith.constant 0 : index
      %c0_18 = arith.constant 0 : index
      %21 = vector.load %arg5[%c0_17, %c0_18] : memref<4x1xf32, #tpu.memory_space<vmem>>, vector<4x1xf32>
      tpu.vector_store %arg5[%c0_17, %c0_18], %20 {strides = array<i32>} : memref<4x1xf32, #tpu.memory_space<vmem>>, vector<4x1xf32>,
    } else {
    }
    %c0 = arith.constant 0 : index
    %c0_2 = arith.constant 0 : index
    %c0_3 = arith.constant 0 : index
    %5 = vector.load %arg3[%c0, %c0_2, %c0_3] : memref<1x4x256xf32, #tpu.memory_space<vmem>>, vector<1x4x256xf32>
    %6 = vector.shape_cast %5 : vector<1x4x256xf32> to vector<4x256xf32>
    %c0_4 = arith.constant 0 : index
    %c0_5 = arith.constant 0 : index
    %7 = vector.load %arg4[%c0_4, %c0_5] : memref<4x1xf32, #tpu.memory_space<vmem>>, vector<4x1xf32>
    %cst = arith.constant dense<0.000000e+00> : vector<4xf32>
    %8 = vector.multi_reduction <add>, %6, %cst [1] : vector<4x256xf32> to vector<4xf32>
    %9 = vector.shape_cast %8 : vector<4xf32> to vector<4x1xf32>
    %10 = arith.addf %7, %9 : vector<4x1xf32>
    %c0_6 = arith.constant 0 : index
    %c0_7 = arith.constant 0 : index
    %11 = vector.load %arg4[%c0_6, %c0_7] : memref<4x1xf32, #tpu.memory_space<vmem>>, vector<4x1xf32>
    tpu.vector_store %arg4[%c0_6, %c0_7], %10 {strides = array<i32>} : memref<4x1xf32, #tpu.memory_space<vmem>>, vector<4x1xf32>,
    %c0_8 = arith.constant 0 : index
    %c0_9 = arith.constant 0 : index
    %12 = vector.load %arg5[%c0_8, %c0_9] : memref<4x1xf32, #tpu.memory_space<vmem>>, vector<4x1xf32>
    %13 = arith.mulf %6, %6 : vector<4x256xf32>
    %cst_10 = arith.constant dense<0.000000e+00> : vector<4xf32>
    %14 = vector.multi_reduction <add>, %13, %cst_10 [1] : vector<4x256xf32> to vector<4xf32>
    %15 = vector.shape_cast %14 : vector<4xf32> to vector<4x1xf32>
    %16 = arith.addf %12, %15 : vector<4x1xf32>
    %c0_11 = arith.constant 0 : index
    %c0_12 = arith.constant 0 : index
    %17 = vector.load %arg5[%c0_11, %c0_12] : memref<4x1xf32, #tpu.memory_space<vmem>>, vector<4x1xf32>
    tpu.vector_store %arg5[%c0_11, %c0_12], %16 {strides = array<i32>} : memref<4x1xf32, #tpu.memory_space<vmem>>, vector<4x1xf32>,
    return
  }
  func.func @transform_0(%arg0: i32, %arg1: i32, %arg2: i32) -> (i32, i32, i32) {
    %c0_i32 = arith.constant 0 : i32
    return %arg1, %arg0, %arg2 : i32, i32, i32
  }
  func.func @transform_1(%arg0: i32, %arg1: i32, %arg2: i32) -> (i32, i32) {
    %c0_i32 = arith.constant 0 : i32
    %c0_i32_0 = arith.constant 0 : i32
    return %arg0, %c0_i32 : i32, i32
  }
  func.func @transform_2(%arg0: i32, %arg1: i32, %arg2: i32) -> (i32, i32) {
    %c0_i32 = arith.constant 0 : i32
    %c0_i32_0 = arith.constant 0 : i32
    return %arg0, %c0_i32 : i32, i32
  }
}

</mosaic_0001>

<bundles_post_ra>
// kernel: tpu_custom_call.1
= control target key start
LH: loop header
LB: loop body
LE: loop exit
PB: predicated region body
PF: predicated region fallthrough
CT: control target
= control target key end

     0   :  { %8 = vsyncpa [#allocation3], 0  ;;  %s623_s0 = inlined_call_operand.hbm [shape: f32[2,4,256], index: 0, kind: input, shape index: {}]   ;;  %s624_s1 = inlined_call_operand.vmem [shape: f32[4,1], index: 1, kind: output, shape index: {0}]   ;;  %s625_s2 = inlined_call_operand.vmem [shape: f32[4,1], index: 2, kind: output, shape index: {1}]  }
   0x1   :  { %10 = vsyncpa [#allocation3 + $0x1], 0  ;;  %s509_s9 = smov 0   ;;  %s511_s10 = smov 0  }
   0x2   :  { %s513_s11 = smov 0   ;;  %s515_s12 = smov 0  }
   0x3   :  { %s517_s13 = smov 0   ;;  %s519_s14 = smov 0  }
   0x4 LB: > { %s340_s15 = sadd.s32 4294967295, %s490_s14   ;;  %s31_s16 = sadd.s32 1, %s486_s13  ;;  %s490_s14 = sphi %s519_s14, %s16_s14   ;;  %s486_s13 = sphi %s517_s13, %s633_s13   ;;  %s482_s12 = sphi %s515_s12, %s632_s12   ;;  %s478_s11 = sphi %s513_s11, %s631_s11   ;;  %s474_s10 = sphi %s511_s10, %s630_s10   ;;  %s470_s9 = sphi %s509_s9, %s629_s9  }
   0x5   : > { %p33_p0 = scmp.ge.s32.totalorder %s31_s16, 2  ;;  %s46_s17 = sadd.s32 1, %s478_s11 }
   0x6   : > { %p53_p1 = scmp.ne.s32.totalorder %s478_s11, %s474_s10  ;;  %p54_p2 = scmp.eq.s32.totalorder %s490_s14, 0 }
   0x7   : > { %s635_s16 = smov (%p33_p0, %s31_s16), 0  ;;  %p59_p4 = scmp.ne.s32.totalorder %s474_s10, %s470_s9 }
   0x8   : > { %p545_p3 = por %p54_p2, %p53_p1  ;;  %s39_s19 = ssub.s32 %s486_s13, %s635_s16 }
   0x9   : > { %p60_p5 = scmp.eq.s32.totalorder %s340_s15, 0  ;;  %p44_p6 = scmp.eq.s32.totalorder %s39_s19, 0 }
   0xa   : > { %p361_p8 = scmp.lt.s32.totalorder %s490_s14, 2  ;;  %s135_s22 = sand.u32 1, %s478_s11  }
   0xb   : > { %p552_p7 = por %p60_p5, %p59_p4  ;;  %s353_s23 = sshll.u32 %s486_s13, 7 }
   0xc   : > { %s558_s21 = scalar_select %p44_p6, %s478_s11, %s46_s17  }
   0xd   : > { %s343_s24 = sshll.u32 %s135_s22, 3  ;;  %s149_s27 = scalar_lea.hbm %s623_s0, %s353_s23 }
   0xe   : > { %s139_s28 = scalar_lea.vmem [#allocation2], %s343_s24  ;;  %p567_p9 = pnand %p361_p8, %p545_p3 }
   0xf   : > { %s151_s29 = sshll.u32 %s139_s28, 4  ;;  %p346_p10 = scmp.ge.s32.totalorder %s490_s14, 1  ;;  %s152_s29 = int_to_ptr.vmem [resolvable:$true] %s151_s29 }
  0x10   : > { %p156_p11 = scmp.lt.s32.totalorder %s490_s14, 3  ;;  %s136_s3 = scalar_lea.sflag [#allocation3], %s135_s22 }
  0x11   : > { %p414_p12 = pneg %p567_p9  ;;  %s425_s4 = scalar_lea.vmem %s152_s29, 128 }
  0x12   : > { %p426_p13 = scmp.ne.s32.totalorder %s152_s29, %s425_s4  ;;  %s492_s5 = smov [#allocation2]  }
  0x13   : > { %s430_s6 = sshll.u32 %s492_s5, 4  ;;  %s431_s6 = int_to_ptr.vmem [resolvable:$false] %s430_s6 }
  0x14   : > { %p428_p0 = pnand %p426_p13, %p414_p12  ;;  %s432_s7 = scalar_lea.vmem %s431_s6, 256 }
  0x15   : > { %p433_p2 = scmp.lt.s32.totalorder %s152_s29, %s431_s6  ;;  %p434_p3 = scmp.lt.s32.totalorder %s432_s7, %s425_s4 }
  0x16   : > { %p429_p1 = pneg %p428_p0 }
  0x17   : > { %p435_p4 = por %p434_p3, %p433_p2 }
  0x19   : > { %p436_p5 = pnand %p435_p4, %p429_p1 }
  0x1b   : > { %439 = shalt.err (!%p436_p5)
}
  0x1c   : > { %360 = dma.hbm_to_vmem [thread:$0]  (!%p567_p9), %s149_s27, 128, %s152_s29, %s136_s3  }
  0x1d   : > { %p157_p6 = pnand %p346_p10, %p156_p11 }
  0x1e   : > { %s162_s8 = sand.u32 (!%p157_p6), 1, %s474_s10  }
  0x1f   : > { %160 = sbr.rel (%p157_p6) target bundleno = 195 (0xc3), region = 24  ;;  %s347_s9 = sshll.u32 (!%p157_p6), %s162_s8, 3 }
  0x20   : > { %s163_s15 = scalar_lea.sflag (!%p157_p6), [#allocation3], %s162_s8  ;;  %s166_s17 = scalar_lea.vmem (!%p157_p6), [#allocation2], %s347_s9 }
  0x24   : > { %465 = dma.done.wait (%p552_p7), %s163_s15, 128  }
  0x25   : > { %467 = vsyncadd (%p552_p7), %s163_s15, 4294967168  ;;  %p199_p8 = scmp.eq.s32.totalorder %s482_s12, 0 }
  0x26   : > { %vm205_vm0 = vcmask (%p199_p8), 3072   ;;  %v493_v0 = vmov (%p199_p8), 0.0  }
  0x27   : > { %204 = sbr.rel (!%p199_p8) target bundleno = 44 (0x2c), region = 32  ;;  %206 = vst.msk [vmem:[%s624_s1] sm:$0xf] (%p199_p8), %vm205_vm0, %v493_v0  ;;  %207 = vst.msk [vmem:[%s625_s2] sm:$0xf] (%p199_p8), %vm205_vm0, %v493_v0 }
  0x2c PF: > { %v208_v1 = vld [vmem:[%s166_s17] sm:$0xff]  ;;  %vm213_vm1 = vcmask 1043456   ;;  %vm220_vm2 = vcmask 3072  }
  0x2d   : > { %v211_v2 = vcombine.high %v208_v1, %v208_v1  ;;  %v214_v3 = vsel %vm213_vm1, %v208_v1, 0.0  ;;  %v223_v4 = vmul.f32 %v208_v1, %v208_v1 }
  0x2e   : > { %v209_v11 = vld [vmem:[%s624_s1] sm:$0xf] }
  0x2f   : > { %v215_v5 = vsel %vm213_vm1, %v211_v2, 0.0  ;;  %v225_v6 = vcombine.high %v223_v4, %v223_v4  ;;  %v227_v7 = vsel %vm213_vm1, %v223_v4, 0.0  ;;  %v222_v14 = vld [vmem:[%s625_s2] sm:$0xf] }
  0x30   : > { %v216_v8 = vadd.f32 %v215_v5, %v214_v3 }
  0x31   : > { %v228_v9 = vsel %vm213_vm1, %v225_v6, 0.0 }
  0x32   : > { %217 = vadd.xlane.f32.xlu0 %v216_v8  ;;  %v229_v10 = vadd.f32 %v228_v9, %v227_v7 }
  0x36   : > { %230 = vadd.xlane.f32.xlu0 %v229_v10 }
  0xbb   : > { %v218_v12 = vpop.xlane.xlu0 %217 }
  0xbc   : > { %v219_v13 = vadd.f32 %v218_v12, %v209_v11 }
  0xbe   : > { %221 = vst.msk [vmem:[%s624_s1] sm:$0xf] %vm220_vm2, %v219_v13 }
  0xbf   : > { %v231_v15 = vpop.xlane.xlu0 %230 }
  0xc0   : > { %v232_v16 = vadd.f32 %v231_v15, %v222_v14 }
  0xc2   : > { %233 = vst.msk [vmem:[%s625_s2] sm:$0xf] %vm220_vm2, %v232_v16 }
  0xc3 PF: > { %s16_s14 = sadd.s32 1, %s490_s14   ;;  %s629_s9 = smov %s474_s10 }
  0xc4   : > { %p13_p7 = scmp.ge.s32.totalorder %s16_s14, 4   ;;  %s630_s10 = smov %s478_s11 }
  0xc5   : > { %s631_s11 = smov %s558_s21  ;;  %s632_s12 = smov %s486_s13 }
  0xc6   : > { %s633_s13 = smov %s635_s16  ;;  %15 = sbr.rel (!%p13_p7) target bundleno = 4 (0x4), region = 80 }
  0xcb   :  { %267 = vsyncpa [#allocation3], 1 }
  0xcc   :  { %269 = vsyncpa [#allocation3 + $0x1], 1 }

</bundles_post_ra>
